<compile_context>
chip_gen: v6e
topology: v6e:2x2x1
jax: 0.10.0
libtpu: 0.0.40
codegen_flags: <defaults>
</compile_context>

<pallas_src>
import functools

import jax
import jax.numpy as jnp
from jax.experimental import pallas as pl
from jax.experimental.pallas import tpu as pltpu


# ----------------------------------------------------------------------------
# Fused kernel: composite encoder matmul -> BBDM mix -> tiny UNet -> SMEM loss
# ----------------------------------------------------------------------------
def _lbbdm_fused_kernel(
    xyp_ref,    # (kin, 2R)          bf16  patchified [x; y], transposed (rows in lanes)
    nz_ref,     # (clat, R)          f32   uniform noise on the latent, transposed
    temb_ref,   # (hidden, N)        f32   time embedding, un-broadcast
    wbig_ref,   # (hidden+clat, kin+1) bf16  [w1^T enc_w^T ; enc_w^T | bias column]
    wmisc_ref,  # (hidden, clat+hidden+1) f32  [w1^T | w2^T (top clat rows) | b2 col]
    msig_ref,   # (2N,)              f32   SMEM: [m_t(b)..., sigma_t(b)...]
    loss_ref,   # (1, 1)             f32   SMEM scalar output
    *,
    n_batch, hw, clat, hidden, kin, loss_type,
):
    f32 = jnp.float32
    r = n_batch * hw

    # ---- one MXU pass: latents AND latents@w1(+b1) for both x and y ----------
    wb = wbig_ref[...]
    big = jnp.dot(wb[:, :kin], xyp_ref[...], preferred_element_type=f32)
    big = big + wb[:, kin:kin + 1].astype(f32)            # folded enc_b / b1 biases
    x_hid = big[:hidden, :r]                               # (x_lat @ w1 + b1)^T
    y_hid = big[:hidden, r:]
    x_lat = big[hidden:hidden + clat, :r]                  # x_lat^T
    y_lat = big[hidden:hidden + clat, r:]                  # y_lat^T

    # ---- per-batch scalars -> per-column vectors, built in-kernel -------------
    col = jax.lax.broadcasted_iota(jnp.int32, (n_batch, r), 1)
    row = jax.lax.broadcasted_iota(jnp.int32, (n_batch, r), 0)
    onehot = ((col >= row * hw) & (col < (row + 1) * hw)).astype(f32)   # (N, r)

    temb = temb_ref[...]                                   # (hidden, N)
    m_cols = jnp.zeros((1, r), f32)
    s_cols = jnp.zeros((1, r), f32)
    temb_cols = jnp.zeros((hidden, r), f32)
    for b in range(n_batch):                               # tiny static unroll
        oh = onehot[b:b + 1, :]                            # (1, r)
        m_cols = m_cols + msig_ref[b] * oh
        s_cols = s_cols + msig_ref[n_batch + b] * oh
        temb_cols = temb_cols + temb[:, b:b + 1] * oh

    # ---- BBDM forward diffusion (latent space, lane-dense, f32) ---------------
    snz = s_cols * nz_ref[...]                             # sigma_t * noise
    added = m_cols * (y_lat - x_lat) + snz                 # nois_added^T

    # ---- timestep-conditioned UNet stand-in ------------------------------------
    wm = wmisc_ref[...]
    w1t = wm[:, :clat]                                     # (hidden, clat)
    w2t = wm[:clat, clat:clat + hidden]                    # (clat, hidden)
    b2c = wm[:clat, clat + hidden:clat + hidden + 1]       # (clat, 1)

    # h = (noisy @ w1 + b1 + temb)^T, with b1 already folded into x_hid / y_hid.
    h = (x_hid + m_cols * (y_hid - x_hid) + temb_cols
         + jnp.dot(w1t, snz, preferred_element_type=f32))
    h = h * pl.reciprocal(1.0 + jnp.exp(-h), approx=True)  # SiLU via EUP
    pred = jnp.dot(w2t, h, preferred_element_type=f32) + b2c

    # ---- reconstruction loss -> single SMEM scalar ------------------------------
    d = added - pred
    if loss_type == "l1":
        total = jnp.sum(jnp.abs(d))
    else:                                                  # 'l2' == F.mse_loss
        total = jnp.sum(d * d)
    loss_ref[0, 0] = total * (1.0 / (clat * r))


def lbbdm_fused(xyp_t, noise_t, temb_t, w_big, w_misc, msig, *, n_batch, hw, loss_type):
    hidden, misc_cols = w_misc.shape
    clat = misc_cols - hidden - 1
    kin = w_big.shape[1] - 1

    kernel = functools.partial(
        _lbbdm_fused_kernel, n_batch=n_batch, hw=hw, clat=clat,
        hidden=hidden, kin=kin, loss_type=loss_type)

    out = pl.pallas_call(
        kernel,
        grid=(1,),
        in_specs=[
            pl.BlockSpec(xyp_t.shape, lambda i: (0, 0)),
            pl.BlockSpec(noise_t.shape, lambda i: (0, 0)),
            pl.BlockSpec(temb_t.shape, lambda i: (0, 0)),
            pl.BlockSpec(w_big.shape, lambda i: (0, 0)),
            pl.BlockSpec(w_misc.shape, lambda i: (0, 0)),
            pl.BlockSpec(memory_space=pltpu.MemorySpace.SMEM),   # m / sigma scalars
        ],
        out_specs=pl.BlockSpec(memory_space=pltpu.MemorySpace.SMEM),
        out_shape=jax.ShapeDtypeStruct((1, 1), jnp.float32),
        compiler_params=pltpu.CompilerParams(
            dimension_semantics=("arbitrary",)),
    )(xyp_t, noise_t, temb_t, w_big, w_misc, msig)
    return out[0, 0]


# ----------------------------------------------------------------------------
# LBBDM module (parameters initialized deterministically in-script)
# ----------------------------------------------------------------------------
class LBBDMPallas:
    def __init__(self, key, timesteps=10, img_channels=3, latent_channels=4,
                 hidden=32, patch=2, loss_type="l2"):
        self.timesteps = timesteps
        self.max_var = 1.0
        self.eta = 1
        self.loss_type = loss_type
        self.patch = patch
        self.latent_channels = latent_channels
        self.hidden = hidden
        # BBDM schedule (matches the PyTorch module exactly).
        self.m_t = jnp.sin(jnp.linspace(0.01, 0.99, timesteps + 1)).astype(jnp.float32)
        self.variance = (2.0 * (self.m_t - self.m_t ** 2) * self.max_var).astype(jnp.float32)

        k0, k1, k2, k3 = jax.random.split(key, 4)
        in_dim = img_channels * patch * patch
        # TODO(synk): stand-ins for diffusers' VQModel encoder (2x2/stride-2 patchify
        # conv == one matmul) and UNet2DModel (timestep-conditioned 2-layer 1x1-conv
        # net); the BBDM diffusion math itself is reproduced exactly.
        enc_w = 0.1 * jax.random.normal(k0, (in_dim, latent_channels), jnp.float32)
        enc_b = jnp.zeros((latent_channels,), jnp.float32)
        self.temb_table = 0.1 * jax.random.normal(k1, (timesteps + 1, hidden), jnp.float32)
        w1 = 0.1 * jax.random.normal(k2, (latent_channels, hidden), jnp.float32)
        b1 = jnp.zeros((hidden,), jnp.float32)
        w2 = 0.1 * jax.random.normal(k3, (hidden, latent_channels), jnp.float32)
        b2 = jnp.zeros((latent_channels,), jnp.float32)

        # Pre-composed big weight: one MXU pass yields [latents@w1+b1 ; latents].
        top = jnp.concatenate([(enc_w @ w1).T, (enc_b @ w1 + b1)[:, None]], axis=1)
        bot = jnp.concatenate([enc_w.T, enc_b[:, None]], axis=1)
        self.w_big = jnp.concatenate([top, bot], axis=0).astype(jnp.bfloat16)   # (hid+clat, in_dim+1)

        # Misc f32 pack: [w1^T | w2^T (top clat rows, rest zero) | b2 column].
        w2t_pad = jnp.zeros((hidden, hidden), jnp.float32).at[:latent_channels, :].set(w2.T)
        b2_pad = jnp.zeros((hidden, 1), jnp.float32).at[:latent_channels, 0].set(b2)
        self.w_misc = jnp.concatenate([w1.T, w2t_pad, b2_pad], axis=1)           # (hid, clat+hid+1)

    def forward(self, timestep, x, y, noise_key):
        # LBBDM.forward: encode x and y to latents, then BBDM.forward on them.
        N, C, H, W = x.shape
        p = self.patch
        h, w = H // p, W // p
        hw = h * w
        R = N * hw
        clat = self.latent_channels
        # Lane-alignment guard: keeps the x/y lane split tile-aligned and lanes dense.
        assert R % 128 == 0, "N*h*w must be a multiple of 128 (pad batch/spatial dims)"

        # Patchify [x;y] straight into the transposed (features, rows) layout.
        # TODO(synk): the real VQModel conv encoder has no compact Pallas form; its
        # patchify data-prep stays in XLA (one transpose of the stacked input).
        xy = jnp.concatenate([x, y], axis=0).reshape(2 * N, C, h, p, w, p)
        xy = jnp.transpose(xy, (1, 3, 5, 0, 2, 4))                 # (C, p, p, 2N, h, w)
        xyp_t = xy.reshape(C * p * p, 2 * R).astype(jnp.bfloat16)  # (kin, 2R)

        # torch.rand_like on the latent -> uniform [0,1) noise (transposed layout).
        noise_t = jax.random.uniform(noise_key, (clat, R), jnp.float32)

        m = self.m_t[timestep]                                     # (N,)
        sigma = jnp.sqrt(self.variance[timestep])                  # (N,)
        msig = jnp.concatenate([m, sigma], axis=0).astype(jnp.float32)   # (2N,) -> SMEM
        temb_t = jnp.transpose(self.temb_table[timestep])          # (hidden, N)

        if self.loss_type not in ("l1", "l2"):
            raise NotImplementedError(self.loss_type)
        return lbbdm_fused(xyp_t, noise_t, temb_t, self.w_big, self.w_misc, msig,
                           n_batch=N, hw=hw, loss_type=self.loss_type)


if __name__ == "__main__":
    key = jax.random.PRNGKey(0)
    pkey, xkey, ykey, tkey, nkey = jax.random.split(key, 5)

    model = LBBDMPallas(pkey, timesteps=10, img_channels=3,
                        latent_channels=4, hidden=32, patch=2, loss_type="l2")

    N, C, H, W = 2, 3, 16, 16
    x = jax.random.normal(xkey, (N, C, H, W), jnp.float32)
    y = jax.random.normal(ykey, (N, C, H, W), jnp.float32)
    timestep = jax.random.randint(tkey, (N,), 0, model.timesteps)

    loss = model.forward(timestep, x, y, nkey)
    jax.block_until_ready(loss)
    assert loss.shape == () and bool(jnp.isfinite(loss))
    print("KERNEL_OK")
</pallas_src>

<mosaic_0001>
module attributes {stable_mosaic.version = 11 : i64} {
  func.func @_lbbdm_fused_kernel(%arg0: i32, %arg1: memref<12x256xbf16, #tpu.memory_space<vmem>>, %arg2: memref<4x128xf32, #tpu.memory_space<vmem>>, %arg3: memref<32x2xf32, #tpu.memory_space<vmem>>, %arg4: memref<36x13xbf16, #tpu.memory_space<vmem>>, %arg5: memref<32x37xf32, #tpu.memory_space<vmem>>, %arg6: memref<4xf32, #tpu.memory_space<smem>>, %arg7: memref<1x1xf32, #tpu.memory_space<smem>>) attributes {dimension_semantics = [#tpu.dimension_semantics<arbitrary>], iteration_bounds = array<i64: 1>, scalar_prefetch = 0 : i64, scratch_operands = 0 : i64, tpu.core_type = #tpu.core_type<tc>, window_params = [{pipeline_mode = #tpu.pipeline_mode<synchronous>, transform_indices = @transform_0, window_bounds = array<i64: 12, 256>}, {pipeline_mode = #tpu.pipeline_mode<synchronous>, transform_indices = @transform_1, window_bounds = array<i64: 4, 128>}, {pipeline_mode = #tpu.pipeline_mode<synchronous>, transform_indices = @transform_2, window_bounds = array<i64: 32, 2>}, {pipeline_mode = #tpu.pipeline_mode<synchronous>, transform_indices = @transform_3, window_bounds = array<i64: 36, 13>}, {pipeline_mode = #tpu.pipeline_mode<synchronous>, transform_indices = @transform_4, window_bounds = array<i64: 32, 37>}, {transform_indices = @transform_5, window_bounds = array<i64: 4>}, {transform_indices = @transform_6, window_bounds = array<i64: 1, 1>}]} {
    %c0 = arith.constant 0 : index
    %c0_0 = arith.constant 0 : index
    %0 = vector.load %arg4[%c0, %c0_0] : memref<36x13xbf16, #tpu.memory_space<vmem>>, vector<36x13xbf16>
    %1 = vector.extract_strided_slice %0 {offsets = [0, 0], sizes = [36, 12], strides = [1, 1]} : vector<36x13xbf16> to vector<36x12xbf16>
    %c0_1 = arith.constant 0 : index
    %c0_2 = arith.constant 0 : index
    %2 = vector.load %arg1[%c0_1, %c0_2] : memref<12x256xbf16, #tpu.memory_space<vmem>>, vector<12x256xbf16>
    %cst = arith.constant dense<0.000000e+00> : vector<36x256xf32>
    %3 = tpu.matmul %1, %2, %cst {dimension_numbers = #tpu.dot_dimension_numbers<[1], [0], [0], [1], [0, 0, 1, 1], [], []>} : vector<36x12xbf16>, vector<12x256xbf16>, vector<36x256xf32> -> vector<36x256xf32>
    %4 = vector.extract_strided_slice %0 {offsets = [0, 12], sizes = [36, 1], strides = [1, 1]} : vector<36x13xbf16> to vector<36x1xbf16>
    %5 = arith.extf %4 : vector<36x1xbf16> to vector<36x1xf32>
    %6 = vector.broadcast %5 : vector<36x1xf32> to vector<36x256xf32>
    %7 = arith.addf %3, %6 : vector<36x256xf32>
    %8 = vector.extract_strided_slice %7 {offsets = [0, 0], sizes = [32, 128], strides = [1, 1]} : vector<36x256xf32> to vector<32x128xf32>
    %9 = vector.extract_strided_slice %7 {offsets = [0, 128], sizes = [32, 128], strides = [1, 1]} : vector<36x256xf32> to vector<32x128xf32>
    %10 = vector.extract_strided_slice %7 {offsets = [32, 0], sizes = [4, 128], strides = [1, 1]} : vector<36x256xf32> to vector<4x128xf32>
    %11 = vector.extract_strided_slice %7 {offsets = [32, 128], sizes = [4, 128], strides = [1, 1]} : vector<36x256xf32> to vector<4x128xf32>
    %12 = tpu.iota {dimensions = array<i32: 1>} : vector<2x128xi32>
    %13 = tpu.iota {dimensions = array<i32: 0>} : vector<2x128xi32>
    %c64_i32 = arith.constant 64 : i32
    %14 = vector.broadcast %c64_i32 : i32 to vector<2x128xi32>
    %15 = arith.muli %13, %14 : vector<2x128xi32>
    %16 = arith.cmpi sge, %12, %15 : vector<2x128xi32>
    %c1_i32 = arith.constant 1 : i32
    %17 = vector.broadcast %c1_i32 : i32 to vector<2x128xi32>
    %18 = arith.addi %13, %17 : vector<2x128xi32>
    %c64_i32_3 = arith.constant 64 : i32
    %19 = vector.broadcast %c64_i32_3 : i32 to vector<2x128xi32>
    %20 = arith.muli %18, %19 : vector<2x128xi32>
    %21 = arith.cmpi slt, %12, %20 : vector<2x128xi32>
    %22 = arith.andi %16, %21 : vector<2x128xi1>
    %23 = arith.extui %22 : vector<2x128xi1> to vector<2x128xi32>
    %24 = arith.sitofp %23 : vector<2x128xi32> to vector<2x128xf32>
    %c0_4 = arith.constant 0 : index
    %c0_5 = arith.constant 0 : index
    %25 = vector.load %arg3[%c0_4, %c0_5] : memref<32x2xf32, #tpu.memory_space<vmem>>, vector<32x2xf32>
    %cst_6 = arith.constant 0.000000e+00 : f32
    %26 = vector.broadcast %cst_6 : f32 to vector<1x128xf32>
    %cst_7 = arith.constant 0.000000e+00 : f32
    %27 = vector.broadcast %cst_7 : f32 to vector<1x128xf32>
    %cst_8 = arith.constant 0.000000e+00 : f32
    %28 = vector.broadcast %cst_8 : f32 to vector<32x128xf32>
    %29 = vector.extract_strided_slice %24 {offsets = [0, 0], sizes = [1, 128], strides = [1, 1]} : vector<2x128xf32> to vector<1x128xf32>
    %c0_9 = arith.constant 0 : index
    %30 = memref.load %arg6[%c0_9] : memref<4xf32, #tpu.memory_space<smem>>
    %31 = vector.broadcast %30 : f32 to vector<1x128xf32>
    %32 = arith.mulf %31, %29 : vector<1x128xf32>
    %33 = arith.addf %26, %32 : vector<1x128xf32>
    %c2 = arith.constant 2 : index
    %34 = memref.load %arg6[%c2] : memref<4xf32, #tpu.memory_space<smem>>
    %35 = vector.broadcast %34 : f32 to vector<1x128xf32>
    %36 = arith.mulf %35, %29 : vector<1x128xf32>
    %37 = arith.addf %27, %36 : vector<1x128xf32>
    %38 = vector.extract_strided_slice %25 {offsets = [0, 0], sizes = [32, 1], strides = [1, 1]} : vector<32x2xf32> to vector<32x1xf32>
    %39 = vector.broadcast %38 : vector<32x1xf32> to vector<32x128xf32>
    %40 = vector.broadcast %29 : vector<1x128xf32> to vector<32x128xf32>
    %41 = arith.mulf %39, %40 : vector<32x128xf32>
    %42 = arith.addf %28, %41 : vector<32x128xf32>
    %43 = vector.extract_strided_slice %24 {offsets = [1, 0], sizes = [1, 128], strides = [1, 1]} : vector<2x128xf32> to vector<1x128xf32>
    %c1 = arith.constant 1 : index
    %44 = memref.load %arg6[%c1] : memref<4xf32, #tpu.memory_space<smem>>
    %45 = vector.broadcast %44 : f32 to vector<1x128xf32>
    %46 = arith.mulf %45, %43 : vector<1x128xf32>
    %47 = arith.addf %33, %46 : vector<1x128xf32>
    %c3 = arith.constant 3 : index
    %48 = memref.load %arg6[%c3] : memref<4xf32, #tpu.memory_space<smem>>
    %49 = vector.broadcast %48 : f32 to vector<1x128xf32>
    %50 = arith.mulf %49, %43 : vector<1x128xf32>
    %51 = arith.addf %37, %50 : vector<1x128xf32>
    %52 = vector.extract_strided_slice %25 {offsets = [0, 1], sizes = [32, 1], strides = [1, 1]} : vector<32x2xf32> to vector<32x1xf32>
    %53 = vector.broadcast %52 : vector<32x1xf32> to vector<32x128xf32>
    %54 = vector.broadcast %43 : vector<1x128xf32> to vector<32x128xf32>
    %55 = arith.mulf %53, %54 : vector<32x128xf32>
    %56 = arith.addf %42, %55 : vector<32x128xf32>
    %c0_10 = arith.constant 0 : index
    %c0_11 = arith.constant 0 : index
    %57 = vector.load %arg2[%c0_10, %c0_11] : memref<4x128xf32, #tpu.memory_space<vmem>>, vector<4x128xf32>
    %58 = vector.broadcast %51 : vector<1x128xf32> to vector<4x128xf32>
    %59 = arith.mulf %58, %57 : vector<4x128xf32>
    %60 = arith.subf %11, %10 : vector<4x128xf32>
    %61 = vector.broadcast %47 : vector<1x128xf32> to vector<4x128xf32>
    %62 = arith.mulf %61, %60 : vector<4x128xf32>
    %63 = arith.addf %62, %59 : vector<4x128xf32>
    %c0_12 = arith.constant 0 : index
    %c0_13 = arith.constant 0 : index
    %64 = vector.load %arg5[%c0_12, %c0_13] : memref<32x37xf32, #tpu.memory_space<vmem>>, vector<32x37xf32>
    %65 = vector.extract_strided_slice %64 {offsets = [0, 0], sizes = [32, 4], strides = [1, 1]} : vector<32x37xf32> to vector<32x4xf32>
    %66 = vector.extract_strided_slice %64 {offsets = [0, 4], sizes = [4, 32], strides = [1, 1]} : vector<32x37xf32> to vector<4x32xf32>
    %67 = vector.extract_strided_slice %64 {offsets = [0, 36], sizes = [4, 1], strides = [1, 1]} : vector<32x37xf32> to vector<4x1xf32>
    %68 = arith.subf %9, %8 : vector<32x128xf32>
    %69 = vector.broadcast %47 : vector<1x128xf32> to vector<32x128xf32>
    %70 = arith.mulf %69, %68 : vector<32x128xf32>
    %71 = arith.addf %8, %70 : vector<32x128xf32>
    %72 = arith.addf %71, %56 : vector<32x128xf32>
    %cst_14 = arith.constant dense<0.000000e+00> : vector<32x128xf32>
    %73 = tpu.matmul %65, %59, %cst_14 {dimension_numbers = #tpu.dot_dimension_numbers<[1], [0], [0], [1], [0, 0, 1, 1], [], []>} : vector<32x4xf32>, vector<4x128xf32>, vector<32x128xf32> -> vector<32x128xf32>
    %74 = arith.addf %72, %73 : vector<32x128xf32>
    %cst_15 = arith.constant 0.000000e+00 : f32
    %75 = vector.broadcast %cst_15 : f32 to vector<32x128xf32>
    %76 = arith.subf %75, %74 : vector<32x128xf32>
    %77 = math.exp %76 : vector<32x128xf32>
    %cst_16 = arith.constant 1.000000e+00 : f32
    %78 = vector.broadcast %cst_16 : f32 to vector<32x128xf32>
    %79 = arith.addf %78, %77 : vector<32x128xf32>
    %80 = tpu.reciprocal %79 {approx = true} : vector<32x128xf32> -> vector<32x128xf32>
    %81 = arith.mulf %74, %80 : vector<32x128xf32>
    %cst_17 = arith.constant dense<0.000000e+00> : vector<4x128xf32>
    %82 = tpu.matmul %66, %81, %cst_17 {dimension_numbers = #tpu.dot_dimension_numbers<[1], [0], [0], [1], [0, 0, 1, 1], [], []>} : vector<4x32xf32>, vector<32x128xf32>, vector<4x128xf32> -> vector<4x128xf32>
    %83 = vector.broadcast %67 : vector<4x1xf32> to vector<4x128xf32>
    %84 = arith.addf %82, %83 : vector<4x128xf32>
    %85 = arith.subf %63, %84 : vector<4x128xf32>
    %86 = arith.mulf %85, %85 : vector<4x128xf32>
    %87 = vector.shape_cast %86 : vector<4x128xf32> to vector<1x4x128xf32>
    %cst_18 = arith.constant dense<0.000000e+00> : vector<1xf32>
    %88 = vector.multi_reduction <add>, %87, %cst_18 [1, 2] : vector<1x4x128xf32> to vector<1xf32>
    %89 = vector.shape_cast %88 : vector<1xf32> to vector<1x1x1xf32>
    %90 = vector.extract %89[0, 0, 0] : f32 from vector<1x1x1xf32>
    %cst_19 = arith.constant 0.001953125 : f32
    %91 = arith.mulf %90, %cst_19 : f32
    %c0_20 = arith.constant 0 : index
    %c0_21 = arith.constant 0 : index
    %92 = memref.load %arg7[%c0_20, %c0_21] : memref<1x1xf32, #tpu.memory_space<smem>>
    memref.store %91, %arg7[%c0_20, %c0_21] : memref<1x1xf32, #tpu.memory_space<smem>>
    return
  }
  func.func @transform_0(%arg0: i32) -> (i32, i32) {
    %c0_i32 = arith.constant 0 : i32
    %c0_i32_0 = arith.constant 0 : i32
    %c0_i32_1 = arith.constant 0 : i32
    return %c0_i32, %c0_i32_0 : i32, i32
  }
  func.func @transform_1(%arg0: i32) -> (i32, i32) {
    %c0_i32 = arith.constant 0 : i32
    %c0_i32_0 = arith.constant 0 : i32
    %c0_i32_1 = arith.constant 0 : i32
    return %c0_i32, %c0_i32_0 : i32, i32
  }
  func.func @transform_2(%arg0: i32) -> (i32, i32) {
    %c0_i32 = arith.constant 0 : i32
    %c0_i32_0 = arith.constant 0 : i32
    %c0_i32_1 = arith.constant 0 : i32
    return %c0_i32, %c0_i32_0 : i32, i32
  }
  func.func @transform_3(%arg0: i32) -> (i32, i32) {
    %c0_i32 = arith.constant 0 : i32
    %c0_i32_0 = arith.constant 0 : i32
    %c0_i32_1 = arith.constant 0 : i32
    return %c0_i32, %c0_i32_0 : i32, i32
  }
  func.func @transform_4(%arg0: i32) -> (i32, i32) {
    %c0_i32 = arith.constant 0 : i32
    %c0_i32_0 = arith.constant 0 : i32
    %c0_i32_1 = arith.constant 0 : i32
    return %c0_i32, %c0_i32_0 : i32, i32
  }
  func.func @transform_5(%arg0: i32) -> i32 {
    %c0_i32 = arith.constant 0 : i32
    %c0_i32_0 = arith.constant 0 : i32
    return %c0_i32 : i32
  }
  func.func @transform_6(%arg0: i32) -> (i32, i32) {
    %c0_i32 = arith.constant 0 : i32
    %c0_i32_0 = arith.constant 0 : i32
    %c0_i32_1 = arith.constant 0 : i32
    return %c0_i32, %c0_i32_0 : i32, i32
  }
}

</mosaic_0001>

<bundles_post_ra>
// kernel: tpu_custom_call.1
= control target key start
LH: loop header
LB: loop body
LE: loop exit
PB: predicated region body
PF: predicated region fallthrough
CT: control target
= control target key end

     0   :  { %11 = vsyncpa [#allocation4], 0  ;;  %s830_s0 = inlined_call_operand.vmem [shape: bf16[12,256], index: 0, kind: input, shape index: {}]   ;;  %s831_s1 = inlined_call_operand.vmem [shape: f32[4,128], index: 1, kind: input, shape index: {}]   ;;  %s832_s2 = inlined_call_operand.vmem [shape: f32[32,2], index: 2, kind: input, shape index: {}]   ;;  %s833_s3 = inlined_call_operand.vmem [shape: bf16[36,13], index: 3, kind: input, shape index: {}]   ;;  %s834_s4 = inlined_call_operand.vmem [shape: f32[32,37], index: 4, kind: input, shape index: {}]   ;;  %s835_s5 = inlined_call_operand.vmem [shape: f32[4], index: 5, kind: input, shape index: {}]   ;;  %s836_s6 = inlined_call_operand.hbm [shape: f32[1,1], index: 6, kind: output, shape index: {}]  }
   0x1   :  { %12 = vsyncpa [#allocation3], 0  ;;  %s29_s23 = sshll.u32 %s835_s5, 4  ;;  %s30_s23 = int_to_ptr.vmem [resolvable:$true] %s29_s23 }
   0x2   :  { %s645_s24 = scalar_lea.vmem %s30_s23, 16  ;;  %p650_p1 = scmp.lt.s32.totalorder %s30_s23, %s30_s23 }
   0x3   :  { %p646_p0 = scmp.ne.s32.totalorder %s30_s23, %s645_s24  ;;  %p651_p2 = scmp.lt.s32.totalorder %s645_s24, %s645_s24 }
   0x5   :  { %p652_p3 = por %p651_p2, %p650_p1 }
   0x7   :  { %p653_p4 = pnand %p652_p3, %p646_p0 }
   0x9   :  { %656 = shalt.err (!%p653_p4)
}
   0xa   :  { %s669_s25 = smov [#allocation2]  }
   0xb   :  { %32 = dma.vmem_to_smem %s30_s23, 16, %s669_s25, [#allocation4]  }
   0xc   :  { %665 = dma.done.wait [#allocation4], 16  }
   0xd   :  { %666 = vsyncadd [#allocation4], 4294967280 }
   0xe   :  { %36 = sfence }
   0xf   :  { %v621_v0 = vld [vmem:[%s830_s0 + $0x4] ss:$8 sps:$4 sm:$0x3f]   ;;  %v174_v1 = vlaneseq  ;;  %vm106_vm0 = vcmask 1045504   ;;  %v670_v4 = vmov 0   ;;  %s729_s9 = sld [smem:[#allocation2]] }
  0x10   :  { %v623_v2 = vld [vmem:[%s830_s0] ss:$8 sps:$4 sm:$0x3f]   ;;  %548 = vmatprep.subr.msk.bf16.mxu0 %vm106_vm0, %v621_v0  ;;  %145 = vmatprep.mubr.bf16.mxu0 %v670_v4  ;;  %s731_s10 = sld [smem:[#allocation2 + $0x2]]  ;;  %vm96_vm1 = vcmask 97280   ;;  %vm305_vm2 = vcmask 31744  }
  0x11   :  { %v38_v3 = vld [vmem:[%s833_s3] sm:$0xff]   ;;  %v40_v5 = vld [vmem:[%s833_s3 + $0x8] sm:$0xff]   ;;  %v175_v6 = vand.u32 127, %v174_v1  ;;  %v177_v7 = vshrl.u32 %v174_v1, 7  ;;  %v108_v8 = vsel %vm106_vm0, %v623_v2, 0  ;;  %613 = vset.pattern.permute.xlu1 %v670_v4  ;;  %s554_s0 = sld [smem:[#allocation2 + $0x1]] }
  0x12   :  { %v47_v9 = vunpack.c.l.bf16 %v40_v5  ;;  %128 = vmatpush1.bf16.msra.mxu0 %v108_v8  ;;  %s734_s11 = sld [smem:[#allocation2 + $0x3]]  ;;  %v739_v12 = vld [vmem:[%s834_s4] sm:$0xff]  ;;  %v48_v13 = vunpack.c.h.bf16 %v40_v5  ;;  %v45_v14 = vunpack.c.l.bf16 %v38_v3  ;;  %v46_v15 = vunpack.c.h.bf16 %v38_v3  ;;  %v189_v18 = vld [vmem:[%s832_s2 + $0x18] sm:$0xff]  ;;  %v188_v38 = vld [vmem:[%s832_s2 + $0x10] sm:$0xff]  ;;  %s674_s28 = smov 124  }
  0x13   :  { %v178_v10 = vmul.u32 64, %v177_v7  ;;  %v180_v11 = vadd.s32 1, %v177_v7  ;;  %574 = vmatprep.mubr.msk.f32.mxu1 %vm305_vm2, %v739_v12  ;;  %215 = vperm.xlu1 %613, %v189_v18   ;;  %v671_v21 = vmov 12   ;;  %v262_v22 = vsub.s32 1, %v177_v7  ;;  %v272_v42 = vld [vmem:[%s831_s1] sm:$0xf] }
  0x14   :  { %v603_v19 = vpack.i.bf16 %v47_v9, %v48_v13  ;;  %602 = vset.pattern.permute.xlu0 %v671_v21  ;;  %v608_v24 = vpack.i.bf16 %v45_v14, %v46_v15  ;;  %v672_v25 = vmov 0.0   ;;  %v220_v27 = vsub.s32 0, %v177_v7  ;;  %v187_v45 = vld [vmem:[%s832_s2 + $0x8] sm:$0xff]  ;;  %v287_v48 = vld [vmem:[%s834_s4 + $0x10] sm:$0xff]  ;;  %v186_v49 = vld [vmem:[%s832_s2] sm:$0xff]  ;;  %s677_s30 = smov [#allocation5]  }
  0x15   :  { %vm741_vm3 = vcmp.ge.s32.totalorder %v175_v6, %v178_v10  ;;  %v181_v17 = vmul.u32 64, %v180_v11  ;;  %549 = vmatmul.mubr.msk.bf16.vlgmr.msra.gmra.mxu0 %vm96_vm1, %v38_v3  ;;  %v191_v20 = vstv %s729_s9  ;;  %v673_v32 = vmov 1   ;;  %v286_v47 = vld [vmem:[%s834_s4 + $0x8] sm:$0xff]  ;;  %v288_v50 = vld [vmem:[%s834_s4 + $0x18] sm:$0xff]  ;;  %v42_v51 = vld [vmem:[%s833_s3 + $0x10] sm:$0x3] }
  0x16   :  { %155 = vmatprep.mubr.bf16.mxu0 %v670_v4  ;;  %v195_v23 = vstv %s731_s10  ;;  %604 = vperm.xlu0 %602, %v603_v19   ;;  %vm318_vm6 = vcmask 1043456   ;;  %v545_v52 = vcombine.low %v42_v51, %v42_v51  ;;  %vm675_vm7 = vmmov 0  }
  0x17   :  { %vm182_vm4 = vcmp.lt.s32.totalorder %v175_v6, %v181_v17  ;;  %v231_v28 = vstv %s554_s0  ;;  %614 = vset.pattern.permute.xlu1 %v673_v32  ;;  %v49_v63 = vunpack.c.l.bf16 %v42_v51  ;;  %v676_v1 = vmov 36  }
  0x18   :  { %vm183_vm5 = vmand %vm741_vm3, %vm182_vm4  ;;  %v238_v31 = vstv %s734_s11  ;;  %257 = vperm.xlu1 %614, %v189_v18   ;;  %vm441_vm8 = vcmask 261120  }
  0x19   :  { %v552_v26 = vsel %vm183_vm5, 1.0, %v672_v25 }
  0x1a   :  { %v192_v29 = vmul.f32 %v552_v26, %v191_v20  ;;  %v232_v30 = vmul.f32 %v552_v26, %v231_v28  ;;  %v196_v33 = vmul.f32 %v552_v26, %v195_v23  ;;  %v239_v34 = vmul.f32 %v552_v26, %v238_v31  ;;  %609 = vperm.xlu0 %602, %v608_v24  }
  0x1b   :  { %v758_v35 = vrot.slane %v552_v26, %v220_v27  ;;  %v760_v36 = vrot.slane %v552_v26, %v262_v22 }
  0x1c   :  { %v234_v37 = vrot.slane %v232_v30, 1  ;;  %v241_v39 = vrot.slane %v239_v34, 1  ;;  %253 = vperm.xlu1 %614, %v188_v38  }
  0x1d   :  { %550 = vmatmul.mubr.msk.bf16.gmra.mxu0 %vm96_vm1, %v40_v5 }
  0x1e   :  { %v236_v40 = vadd.f32 %v234_v37, %v192_v29  ;;  %v243_v41 = vadd.f32 %v241_v39, %v196_v33  ;;  %165 = vmatprep.mubr.bf16.mxu0 %v670_v4  ;;  %615 = vset.pattern.permute.xlu0 %v670_v4 }
  0x1f   :  { %210 = vperm.xlu0 %615, %v188_v38  }
  0x20   :  { %v770_v43 = vrot.slane %v236_v40, %v220_v27  ;;  %v276_v44 = vrot.slane %v243_v41, %v220_v27  ;;  %616 = vset.pattern.permute.xlu1 %v670_v4 }
  0x21   :  { %205 = vperm.xlu1 %616, %v187_v45  }
  0x22   :  { %v776_v46 = vmul.f32 %v276_v44, %v272_v42 }
  0x23   :  { %617 = vset.pattern.permute.xlu0 %v673_v32 }
  0x24   :  { %572 = vmatprep.subr.msk.mxu1 %vm318_vm6, %v776_v46  ;;  %249 = vperm.xlu0 %617, %v187_v45  }
  0x25   :  { %573 = vmatpush3.msk.msra.mxu1 %vm318_vm6, %v776_v46  ;;  %200 = vperm.xlu1 %616, %v186_v49  }
  0x26   :  { %575 = vmatmul.mubr.msk.f32.vlgmr.msra.gmra.mxu1 %vm305_vm2, %v286_v47  ;;  %580 = vmatprep.subr.mxu1 %v672_v25 }
  0x27   :  { %577 = vmatprep.mubr.msk.f32.mxu1 %vm305_vm2, %v287_v48  ;;  %551 = vmatmul.mubr.msk.bf16.gmra.mxu0 %vm96_vm1, %v545_v52 }
  0x28   :  { %439 = vrot.lane.b32.xlu0 %v739_v12, %s674_s28 }
  0x29   :  { %618 = vset.pattern.permute.xlu1 %v673_v32  ;;  %620 = vset.pattern.permute.xlu0 %v676_v1 }
  0x2a   :  { %578 = vmatmul.mubr.msk.f32.gmra.mxu1 %vm305_vm2, %v288_v50  ;;  %245 = vperm.xlu1 %618, %v186_v49  }
  0x2b   :  { %588 = vmatprep.mubr.msk.f32.mxu1 %vm675_vm7, %v672_v25 }
  0x2c   :  { %436 = vperm.xlu0 %620, %v739_v12  }
  0x2e   :  { %619 = vset.pattern.permute.xlu1 %v671_v21 }
  0x2f   :  { %72 = vperm.xlu1 %619, %v49_v63  }
  0x8e   :  { %v216_v53 = vpop.permute.xlu1 %215 }
  0x8f   :  { %v225_v55 = vmul.f32 %v758_v35, %v216_v53 }
  0x91   :  { %v605_v54 = vpop.permute.xlu0 %604 }
  0x92   :  { %v607_v22 = vunpack.i.h.bf16 %v605_v54  ;;  %v606_v34 = vunpack.i.l.bf16 %v605_v54 }
  0x93   :  { %v258_v56 = vpop.permute.xlu1 %257 }
  0x94   :  { %v267_v57 = vmul.f32 %v760_v36, %v258_v56 }
  0x95   :  { %v610_v58 = vpop.permute.xlu0 %609 }
  0x96   :  { %v806_v59 = vadd.f32 %v267_v57, %v225_v55  ;;  %v612_v14 = vunpack.i.h.bf16 %v610_v58  ;;  %v611_v17 = vunpack.i.l.bf16 %v610_v58 }
  0x97   :  { %v254_v60 = vpop.permute.xlu1 %253 }
  0x98   :  { %v266_v61 = vmul.f32 %v760_v36, %v254_v60 }
  0x9a   :  { %v211_v62 = vpop.permute.xlu0 %210 }
  0x9b   :  { %v224_v0 = vmul.f32 %v758_v35, %v211_v62 }
  0x9c   :  { %v206_v2 = vpop.permute.xlu1 %205 }
  0x9d   :  { %v270_v3 = vadd.f32 %v266_v61, %v224_v0  ;;  %v223_v4 = vmul.f32 %v758_v35, %v206_v2 }
  0x9f   :  { %v250_v5 = vpop.permute.xlu0 %249 }
  0xa0   :  { %v265_v6 = vmul.f32 %v760_v36, %v250_v5  ;;  %v201_v7 = vpop.permute.xlu1 %200 }
  0xa1   :  { %v222_v9 = vmul.f32 %v758_v35, %v201_v7 }
  0xa2   :  { %v269_v8 = vadd.f32 %v265_v6, %v223_v4 }
  0xa5   :  { %v246_v10 = vpop.permute.xlu1 %245 }
  0xa6   :  { %v264_v11 = vmul.f32 %v760_v36, %v246_v10 }
  0xa8   :  { %v268_v13 = vadd.f32 %v264_v11, %v222_v9 }
  0xd5   :  { %v147_v15 = vpop.f32.mrf.mxu0 }
  0xd6   :  { %v148_v18 = vadd.f32 %v612_v14, %v147_v15 }
  0xd7   :  { %v149_v16 = vpop.f32.mrf.mxu0 }
  0xd8   :  { %v150_v12 = vadd.f32 %v612_v14, %v149_v16 }
  0xd9   :  { %v151_v19 = vpop.f32.mrf.mxu0 }
  0xda   :  { %v289_v20 = vsub.f32 %v150_v12, %v148_v18  ;;  %v152_v23 = vadd.f32 %v611_v17, %v151_v19 }
  0xdb   :  { %v153_v21 = vpop.f32.mrf.mxu0 }
  0xdc   :  { %v154_v24 = vadd.f32 %v611_v17, %v153_v21  ;;  %v293_v28 = vmul.f32 %v289_v20, %v770_v43  ;;  %v440_v20 = vpop.permute.xlu0 %439  ;;  %v73_v21 = vpop.permute.xlu1 %72 }
  0xdd   :  { %v157_v26 = vpop.f32.mrf.mxu0 }
  0xde   :  { %v290_v27 = vsub.f32 %v154_v24, %v152_v23  ;;  %v158_v31 = vadd.f32 %v607_v22, %v157_v26  ;;  %v297_v38 = vadd.f32 %v293_v28, %v148_v18 }
  0xdf   :  { %v159_v29 = vpop.f32.mrf.mxu0 }
  0xe0   :  { %v294_v30 = vmul.f32 %v290_v27, %v770_v43  ;;  %v160_v32 = vadd.f32 %v607_v22, %v159_v29  ;;  %v301_v48 = vadd.f32 %v297_v38, %v268_v13 }
  0xe1   :  { %v161_v33 = vpop.f32.mrf.mxu0 }
  0xe2   :  { %v291_v35 = vsub.f32 %v160_v32, %v158_v31  ;;  %v298_v36 = vadd.f32 %v294_v30, %v152_v23  ;;  %v162_v40 = vadd.f32 %v606_v34, %v161_v33 }
  0xe3   :  { %v163_v37 = vpop.f32.mrf.mxu0 }
  0xe4   :  { %v295_v39 = vmul.f32 %v291_v35, %v770_v43  ;;  %v164_v41 = vadd.f32 %v606_v34, %v163_v37  ;;  %v302_v42 = vadd.f32 %v298_v36, %v269_v8 }
  0xe6   :  { %v292_v44 = vsub.f32 %v164_v41, %v162_v40  ;;  %v576_v45 = vpop.f32.mrf.mxu1  ;;  %v299_v49 = vadd.f32 %v295_v39, %v158_v31  ;;  %v437_v31 = vpop.permute.xlu0 %436 }
  0xe7   :  { %v408_v47 = vadd.f32 %v576_v45, %v302_v42  ;;  %v167_v22 = vpop.f32.mrf.mxu0 }
  0xe8   :  { %v296_v50 = vmul.f32 %v292_v44, %v770_v43  ;;  %v388_v51 = vpop.f32.mrf.mxu1  ;;  %v303_v57 = vadd.f32 %v299_v49, %v270_v3  ;;  %v168_v23 = vadd.f32 %v167_v22, %v73_v21 }
  0xe9   :  { %v412_v52 = vsub.f32 0.0, %v408_v47  ;;  %v407_v53 = vadd.f32 %v388_v51, %v301_v48  ;;  %v169_v24 = vpop.f32.mrf.mxu0 }
  0xea   :  { %v300_v54 = vadd.f32 %v296_v50, %v162_v40  ;;  %v579_v55 = vpop.f32.mrf.mxu1  ;;  %v170_v26 = vadd.f32 %v169_v24, %v73_v21 }
  0xeb   :  { %v411_v56 = vsub.f32 0.0, %v407_v53  ;;  %v417_v61 = vmul.f32 1.442695, %v412_v52  ;;  %v171_v27 = vpop.f32.mrf.mxu0 }
  0xec   :  { %v304_v58 = vadd.f32 %v300_v54, %v806_v59  ;;  %v398_v60 = vpop.f32.mrf.mxu1  ;;  %v278_v28 = vsub.f32 %v170_v26, %v168_v23 }
  0xed   :  { %v409_v62 = vadd.f32 %v398_v60, %v303_v57  ;;  %v415_v63 = vmul.f32 1.442695, %v411_v56  ;;  %629 = vpow2.f32 %v417_v61  ;;  %v172_v29 = vpop.f32.mrf.mxu0 }
  0xee   :  { %v410_v0 = vadd.f32 %v579_v55, %v304_v58  ;;  %v283_v30 = vmul.f32 %v770_v43, %v278_v28 }
  0xef   :  { %v413_v1 = vsub.f32 0.0, %v409_v62  ;;  %631 = vpow2.f32 %v415_v63 }
  0xf0   :  { %v414_v2 = vsub.f32 0.0, %v410_v0  ;;  %v284_v33 = vadd.f32 %v283_v30, %v776_v46 }
  0xf1   :  { %v419_v4 = vmul.f32 1.442695, %v413_v1 }
  0xf2   :  { %v421_v5 = vmul.f32 1.442695, %v414_v2 }
  0xf3   :  { %633 = vpow2.f32 %v419_v4 }
  0xf4   :  { %635 = vpow2.f32 %v421_v5 }
  0xfa   :  { %v630_v6 = vpop.eup %629 }
  0xfb   :  { %v424_v10 = vadd.f32 1.0, %v630_v6 }
  0xfc   :  { %v632_v7 = vpop.eup %631 }
  0xfd   :  { %v423_v11 = vadd.f32 1.0, %v632_v7 }
 0x100   :  { %v634_v8 = vpop.eup %633 }
 0x101   :  { %v636_v9 = vpop.eup %635  ;;  %v425_v3 = vadd.f32 1.0, %v634_v8 }
 0x102   :  { %v426_v59 = vadd.f32 1.0, %v636_v9 }
 0x103   :  { %637 = vrcp.f32 %v425_v3 }
 0x104   :  { %639 = vrcp.f32 %v426_v59 }
 0x105   :  { %641 = vrcp.f32 %v424_v10 }
 0x106   :  { %643 = vrcp.f32 %v423_v11 }
 0x110   :  { %v638_v13 = vpop.eup %637 }
 0x111   :  { %v640_v14 = vpop.eup %639  ;;  %v433_v17 = vmul.f32 %v638_v13, %v409_v62 }
 0x112   :  { %v434_v15 = vmul.f32 %v640_v14, %v410_v0  ;;  %v642_v16 = vpop.eup %641 }
 0x113   :  { %v644_v12 = vpop.eup %643  ;;  %v432_v18 = vmul.f32 %v642_v16, %v408_v47 }
 0x114   :  { %581 = vmatpush3.msra.mxu1 %v434_v15  ;;  %v431_v19 = vmul.f32 %v644_v12, %v407_v53 }
 0x115   :  { %582 = vmatprep.subr.mxu1 %v672_v25 }
 0x116   :  { %583 = vmatpush3.msra.mxu1 %v433_v17 }
 0x117   :  { %584 = vmatprep.subr.mxu1 %v672_v25 }
 0x118   :  { %585 = vmatpush3.msra.mxu1 %v432_v18 }
 0x119   :  { %586 = vmatprep.subr.mxu1 %v672_v25 }
 0x11a   :  { %587 = vmatpush3.msra.mxu1 %v431_v19 }
 0x11b   :  { %589 = vmatmul.mubr.msk.f32.vlgmr.msra.gmra.mxu1 %vm441_vm8, %v440_v20 }
 0x1db   :  { %v510_v32 = vpop.f32.mrf.mxu1 }
 0x1dc   :  { %v511_v34 = vadd.f32 %v510_v32, %v437_v31 }
 0x1dd   :  { %v590_v35 = vpop.f32.mrf.mxu1 }
 0x1de   :  { %v514_v36 = vsub.f32 %v284_v33, %v511_v34 }
 0x1e0   :  { %v515_v25 = vmul.f32 %v514_v36, %v514_v36 }
 0x1e2   :  { %v516_v37 = vsel %vm318_vm6, %v515_v25, 0.0 }
 0x1e3   :  { %517 = vadd.xlane.f32.xlu1 %v516_v37 }
 0x26c   :  { %v518_v38 = vpop.xlane.xlu1 %517 }
 0x26d   :  { %v519_v39 = vrot.slane %v518_v38, 4 }
 0x26f   :  { %v520_v40 = vadd.f32 %v519_v39, %v518_v38 }
 0x271   :  { %v521_v41 = vrot.slane %v520_v40, 2 }
 0x273   :  { %v522_v42 = vadd.f32 %v521_v41, %v520_v40 }
 0x275   :  { %v523_v44 = vrot.slane %v522_v42, 1 }
 0x277   :  { %v524_v45 = vadd.f32 %v523_v44, %v522_v42 }
 0x279   :  { %591 = vpush %v524_v45 }
 0x2aa   :  { %s592_s3 = spop %591 }
 0x2ab   :  { %s526_s4 = smul.f32 0.001953125, %s592_s3 }
 0x2ad   :  { %528 = sst [smem:[#allocation5]] %s526_s4 }
 0x2ae   :  { %536 = dma.smem_to_hbm %s677_s30, 16, %s836_s6, [#allocation3]  }
 0x2af   :  { %667 = dma.done.wait [#allocation3], 16  }
 0x2b0   :  { %668 = vsyncadd [#allocation3], 4294967280 }
 0x2b1   :  { %540 = sfence }
 0x2b2   :  { %541 = vsyncpa [#allocation3], 1 }
 0x2b3   :  { %542 = vsyncpa [#allocation4], 1 }

</bundles_post_ra>
